<compile_context>
chip_gen: v6e
topology: v6e:2x2x1
jax: 0.10.0
libtpu: 0.0.40
codegen_flags: <defaults>
</compile_context>

<pallas_src>
import numpy as np
import jax
import jax.numpy as jnp
from jax.experimental import pallas as pl
from jax.experimental.pallas import tpu as pltpu


# Source-id pattern of the 67 output blocks: 0 = a, 1 = b, 2 = c, 3 = v2(=a+b).
_V3_PATTERN = [0, 1, 2, 3, 0, 1, 2, 1, 2, 3, 1, 2, 0, 3, 2, 0, 1, 2, 1, 2, 0]
_FULL_PATTERN = [0] + _V3_PATTERN + [3] + _V3_PATTERN + [3] + _V3_PATTERN + [0]


def _build_selector(n):
    """Single stacked one-hot selector P (3n, 67n) so out = [a|b|c] @ P.

    Rows [0, n)   select from a, rows [n, 2n) from b, rows [2n, 3n) from c.
    v2 (= a + b) output blocks carry identity in both the a-rows and b-rows.
    Stored as bf16 (0/1 exact) to halve the HBM->VMEM DMA; upcast in-kernel.
    """
    nb = len(_FULL_PATTERN)                       # 67 output blocks
    p = np.zeros((3 * n, nb * n), np.float32)
    eye = np.eye(n, dtype=np.float32)
    for j, s in enumerate(_FULL_PATTERN):
        cols = slice(j * n, (j + 1) * n)
        if s == 0:
            p[0 * n:1 * n, cols] = eye
        elif s == 1:
            p[1 * n:2 * n, cols] = eye
        elif s == 2:
            p[2 * n:3 * n, cols] = eye
        else:                                     # v2 = a + b
            p[0 * n:1 * n, cols] = eye
            p[1 * n:2 * n, cols] = eye
    return jnp.asarray(p, dtype=jnp.bfloat16)


def cat_via_matmul_kernel(x_ref, p_ref, out_ref):
    # One gather-by-matmul on the MXU: lane-dense full-row stores, no masked
    # lane inserts, no XLU rotates. precision=HIGHEST keeps the f32 one-hot
    # selection bit-exact (each output element is x*1.0 [+ y*1.0 for v2]
    # accumulated in f32; all other products are exactly zero).
    out_ref[...] = jnp.dot(
        x_ref[...],
        p_ref[...].astype(jnp.float32),
        precision=jax.lax.Precision.HIGHEST,
        preferred_element_type=jnp.float32,
    )


def model_forward(a, b, c):
    m, n = a.shape
    out_cols = len(_FULL_PATTERN) * n             # 67 * N
    x = jnp.concatenate([a, b, c], axis=1)        # (M, 3N) — fused by XLA
    p = _build_selector(n)                        # (3N, 67N) bf16 constant
    vmem = pl.BlockSpec(memory_space=pltpu.MemorySpace.VMEM)
    # Grid-less pallas_call: nothing to pipeline or shard at this size — the
    # whole problem (X + selector + output) is well under 64 KiB and lives in
    # VMEM for a single invocation.
    return pl.pallas_call(
        cat_via_matmul_kernel,
        in_specs=[vmem, vmem],
        out_specs=vmem,
        out_shape=jax.ShapeDtypeStruct((m, out_cols), jnp.float32),
    )(x, p)


def model_reference(a, b, c):
    v2 = b + a
    srcs = {0: a, 1: b, 2: c, 3: v2}
    return jnp.concatenate([srcs[s] for s in _FULL_PATTERN], axis=1)


@jax.jit
def setup_and_forward(a1, a2, b1, b2, c1, c2):
    # Fuse the three tiny setup matmuls into the same jit as the Pallas call
    # (avoids 3 separate XLA dispatches / HBM round-trips for ~32-float data).
    a = jnp.dot(a1, a2)
    b = jnp.dot(b1, b2)
    c = jnp.dot(c1, c2)
    return a, b, c, model_forward(a, b, c)


if __name__ == "__main__":
    key = jax.random.PRNGKey(0)
    k1, k2, k3, k4, k5, k6 = jax.random.split(key, 6)

    # Deterministic construction mirroring the module-level torch.mm setup:
    #   a = (2,3)@(3,4), b = (2,2)@(2,4), c = (2,5)@(5,4)
    a1 = jax.random.normal(k1, (2, 3), jnp.float32)
    a2 = jax.random.normal(k2, (3, 4), jnp.float32)
    b1 = jax.random.normal(k3, (2, 2), jnp.float32)
    b2 = jax.random.normal(k4, (2, 4), jnp.float32)
    c1 = jax.random.normal(k5, (2, 5), jnp.float32)
    c2 = jax.random.normal(k6, (5, 4), jnp.float32)

    a, b, c, out = setup_and_forward(a1, a2, b1, b2, c1, c2)
    out = jax.block_until_ready(out)

    ref = model_reference(a, b, c)
    assert out.shape == (2, 67 * 4), out.shape
    assert jnp.allclose(out, ref, atol=1e-6, rtol=1e-6), float(
        jnp.max(jnp.abs(out - ref)))
    print("KERNEL_OK")
</pallas_src>

<mosaic_0001>
module attributes {stable_mosaic.version = 11 : i64} {
  func.func @cat_via_matmul_kernel(%arg0: memref<2x12xf32, #tpu.memory_space<vmem>>, %arg1: memref<12x268xbf16, #tpu.memory_space<vmem>>, %arg2: memref<2x268xf32, #tpu.memory_space<vmem>>) attributes {dimension_semantics = [], scalar_prefetch = 0 : i64, scratch_operands = 0 : i64, tpu.core_type = #tpu.core_type<tc>} {
    %c0 = arith.constant 0 : index
    %c0_0 = arith.constant 0 : index
    %0 = vector.load %arg0[%c0, %c0_0] : memref<2x12xf32, #tpu.memory_space<vmem>>, vector<2x12xf32>
    %c0_1 = arith.constant 0 : index
    %c0_2 = arith.constant 0 : index
    %1 = vector.load %arg1[%c0_1, %c0_2] : memref<12x268xbf16, #tpu.memory_space<vmem>>, vector<12x268xbf16>
    %2 = arith.extf %1 : vector<12x268xbf16> to vector<12x268xf32>
    %cst = arith.constant dense<0.000000e+00> : vector<2x268xf32>
    %3 = tpu.matmul %0, %2, %cst {dimension_numbers = #tpu.dot_dimension_numbers<[1], [0], [0], [1], [0, 0, 1, 1], [], []>, precision = #tpu.contract_precision<fp32>} : vector<2x12xf32>, vector<12x268xf32>, vector<2x268xf32> -> vector<2x268xf32>
    %c0_3 = arith.constant 0 : index
    %c0_4 = arith.constant 0 : index
    %4 = vector.load %arg2[%c0_3, %c0_4] : memref<2x268xf32, #tpu.memory_space<vmem>>, vector<2x268xf32>
    tpu.vector_store %arg2[%c0_3, %c0_4], %3 {strides = array<i32>} : memref<2x268xf32, #tpu.memory_space<vmem>>, vector<2x268xf32>,
    return
  }
}

</mosaic_0001>

<bundles_post_ra>
// kernel: setup_and_forward.1
= control target key start
LH: loop header
LB: loop body
LE: loop exit
PB: predicated region body
PF: predicated region fallthrough
CT: control target
= control target key end

     0   :  { %vm27_vm0 = vcmask 1043456   ;;  %vm23_vm1 = vcmask 97280   ;;  %v1104_v6 = vmov 0.0   ;;  %s1242_s0 = inlined_call_operand.vmem [shape: f32[2,12], index: 0, kind: input, shape index: {}]   ;;  %s1243_s1 = inlined_call_operand.vmem [shape: bf16[12,268], index: 1, kind: input, shape index: {}]   ;;  %s1244_s2 = inlined_call_operand.hbm [shape: f32[2,268], index: 2, kind: output, shape index: {}]  }
   0x1   :  { %v15_v0 = vld [vmem:[%s1243_s1 + $0xc] sm:$0x33]  ;;  %v13_v1 = vld [vmem:[%s1243_s1] sm:$0xff]  ;;  %103 = vmatprep.mubr.f32.mxu0 %v1104_v6  ;;  %197 = vmatprep.mubr.f32.mxu1 %v1104_v6 }
   0x2   :  { %v1129_v2 = vunpack.c.h.bf16 %v15_v0  ;;  %v1131_v3 = vunpack.c.l.bf16 %v15_v0  ;;  %v1133_v4 = vunpack.c.h.bf16 %v13_v1  ;;  %v1135_v5 = vunpack.c.l.bf16 %v13_v1  ;;  %v12_v7 = vld [vmem:[%s1242_s0] sm:$0x3] }
   0x3   :  { %v25_v8 = vsel %vm23_vm1, %v12_v7, 0 }
   0x4   :  { %7 = vsyncpa [#allocation3], 0  ;;  %1009 = vmatprep.subr.msk.mxu0 %vm27_vm0, %v1129_v2  ;;  %v32_v9 = vsel %vm27_vm0, %v1129_v2, 0  ;;  %v1146_v10 = vand.u32 4294901760, %v25_v8  ;;  %v29_v11 = vsel %vm27_vm0, %v1131_v3, 0  ;;  %v155_v12 = vsub.f32 %v1133_v4, %v1133_v4 }
   0x5   :  { %1010 = vmatpush1.msk.msra.mxu0 %vm27_vm0, %v1131_v3  ;;  %v144_v13 = vsub.f32 %v32_v9, %v32_v9  ;;  %v150_v14 = vsub.f32 %v29_v11, %v29_v11  ;;  %v160_v15 = vsub.f32 %v1135_v5, %v1135_v5  ;;  %v16_v16 = vld [vmem:[%s1243_s1 + $0x14] sm:$0x3]  ;;  %v14_v29 = vld [vmem:[%s1243_s1 + $0x8] sm:$0xf]  ;;  %vm1105_vm2 = vmmov 0   ;;  %s1107_s1 = smov [#allocation2]  }
   0x6   :  { %69 = vmatprep.subr.mxu0 %v1133_v4  ;;  %v1161_v17 = vsub.f32 %v25_v8, %v1146_v10  ;;  %v156_v18 = vand.u32 4294901760, %v155_v12  ;;  %v1167_v24 = vunpack.c.l.bf16 %v16_v16  ;;  %v1176_v36 = vunpack.c.l.bf16 %v14_v29  ;;  %s1001_s18 = sshll.u32 %s1107_s1, 4  ;;  %s1002_s18 = int_to_ptr.vmem [resolvable:$true] %s1001_s18 }
   0x7   :  { %70 = vmatpush1.msra.mxu0 %v1135_v5  ;;  %v145_v19 = vand.u32 4294901760, %v144_v13  ;;  %v151_v20 = vand.u32 4294901760, %v150_v14  ;;  %v161_v21 = vand.u32 4294901760, %v160_v15  ;;  %vm989_vm3 = vcmask 1041408   ;;  %s1082_s19 = scalar_lea.vmem %s1002_s18, 96  ;;  %p1087_p1 = scmp.lt.s32.totalorder %s1002_s18, %s1002_s18 }
   0x8   :  { %v1165_v22 = vand.u32 4294901760, %v1161_v17  ;;  %235 = vmatprep.subr.mxu0 %v144_v13  ;;  %v157_v23 = vsub.f32 %v155_v12, %v156_v18  ;;  %v35_v35 = vsel %vm27_vm0, %v1167_v24, 0  ;;  %v628_v38 = vsub.f32 %v1176_v36, %v1176_v36  ;;  %p1083_p0 = scmp.ne.s32.totalorder %s1002_s18, %s1082_s19  ;;  %p1088_p2 = scmp.lt.s32.totalorder %s1082_s19, %s1082_s19 }
   0x9   :  { %v146_v25 = vsub.f32 %v144_v13, %v145_v19  ;;  %v152_v26 = vsub.f32 %v150_v14, %v151_v20  ;;  %v162_v27 = vsub.f32 %v160_v15, %v161_v21  ;;  %v622_v37 = vsub.f32 %v35_v35, %v35_v35 }
   0xa   :  { %v107_v28 = vsub.f32 %v1161_v17, %v1165_v22  ;;  %v158_v32 = vand.u32 4294901760, %v157_v23  ;;  %v629_v40 = vand.u32 4294901760, %v628_v38  ;;  %vm990_vm4 = vcmask 1043458   ;;  %p1089_p3 = por %p1088_p2, %p1087_p1 }
   0xb   :  { %v147_v30 = vand.u32 4294901760, %v146_v25  ;;  %v153_v31 = vand.u32 4294901760, %v152_v26  ;;  %v163_v34 = vand.u32 4294901760, %v162_v27  ;;  %v623_v39 = vand.u32 4294901760, %v622_v37  ;;  %vm991_vm5 = vmor %vm990_vm4, %vm989_vm3 }
   0xc   :  { %v108_v33 = vand.u32 4294901760, %v107_v28  ;;  %v630_v42 = vsub.f32 %v628_v38, %v629_v40  ;;  %vm992_vm6 = vcmask 95236   ;;  %p1090_p4 = pnand %p1089_p3, %p1083_p0 }
   0xd   :  { %148 = vmatprep.subr.mxu1 %v147_v30  ;;  %v624_v41 = vsub.f32 %v622_v37, %v623_v39  ;;  %vm993_vm7 = vmor %vm992_vm6, %vm991_vm5 }
   0xe   :  { %109 = vmatmul.mubr.f32.vlgmr.msra.gmra.mxu0 %v108_v33  ;;  %154 = vmatpush1.msra.mxu1 %v153_v31  ;;  %v631_v44 = vand.u32 4294901760, %v630_v42 }
   0xf   :  { %159 = vmatprep.subr.mxu1 %v158_v32  ;;  %238 = vmatpush1.msra.mxu0 %v150_v14  ;;  %v625_v43 = vand.u32 4294901760, %v624_v41 }
  0x10   :  { %164 = vmatpush1.msra.mxu1 %v163_v34  ;;  %240 = vmatprep.subr.mxu0 %v155_v12 }
  0x11   :  { %199 = vmatmul.mubr.f32.vlgmr.msra.gmra.mxu1 %v1146_v10  ;;  %242 = vmatpush1.msra.mxu0 %v160_v15 }
  0x12   :  { %275 = vmatprep.mubr.f32.mxu0 %v1104_v6  ;;  %1011 = vmatprep.subr.msk.mxu1 %vm27_vm0, %v1129_v2 }
  0x13   :  { %278 = vmatmul.mubr.f32.vlgmr.msra.gmra.mxu0 %v1161_v17  ;;  %1012 = vmatpush1.msk.msra.mxu1 %vm27_vm0, %v1131_v3 }
  0x14   :  { %391 = vmatprep.subr.mxu0 %v145_v19  ;;  %316 = vmatprep.subr.mxu1 %v1133_v4 }
  0x15   :  { %395 = vmatpush1.msra.mxu0 %v151_v20  ;;  %317 = vmatpush1.msra.mxu1 %v1135_v5 }
  0x16   :  { %350 = vmatprep.mubr.f32.mxu1 %v1104_v6  ;;  %398 = vmatprep.subr.mxu0 %v156_v18 }
  0x17   :  { %354 = vmatmul.mubr.f32.vlgmr.msra.gmra.mxu1 %v1165_v22  ;;  %401 = vmatpush1.msra.mxu0 %v161_v21 }
  0x18   :  { %434 = vmatprep.mubr.f32.mxu0 %v1104_v6  ;;  %1013 = vmatprep.subr.msk.mxu1 %vm27_vm0, %v1129_v2 }
  0x19   :  { %436 = vmatmul.mubr.f32.vlgmr.msra.gmra.mxu0 %v1146_v10  ;;  %1014 = vmatpush1.msk.msra.mxu1 %vm27_vm0, %v1131_v3 }
  0x1a   :  { %1036 = vmatprep.subr.mxu0 %v1104_v6  ;;  %474 = vmatprep.subr.mxu1 %v1133_v4  ;;  %v1106_v4 = vmov 1983009808  }
  0x1b   :  { %1037 = vmatpush3.msk.msra.mxu0 %vm27_vm0, %v1167_v24  ;;  %475 = vmatpush1.msra.mxu1 %v1135_v5  ;;  %v974_v5 = vunpack.c.l.s4 %v1106_v4 }
  0x1c   :  { %508 = vmatprep.mubr.f32.mxu1 %v1104_v6  ;;  %1038 = vmatprep.subr.mxu0 %v1104_v6 }
  0x1d   :  { %510 = vmatmul.mubr.f32.vlgmr.msra.gmra.mxu1 %v1146_v10  ;;  %1039 = vmatpush3.msra.mxu0 %v1176_v36  ;;  %v975_v13 = vunpack.c.0.s8 %v974_v5 }
  0x1e   :  { %1040 = vmatprep.mubr.msk.f32.mxu0 %vm1105_vm2, %v1104_v6  ;;  %1043 = vmatprep.subr.mxu1 %v1104_v6 }
  0x1f   :  { %1041 = vmatmul.mubr.f32.vlgmr.msra.gmra.mxu0 %v108_v33  ;;  %1044 = vmatpush3.msra.mxu1 %v625_v43 }
  0x20   :  { %1050 = vmatprep.subr.mxu0 %v1104_v6  ;;  %1045 = vmatprep.subr.mxu1 %v1104_v6 }
  0x21   :  { %1051 = vmatpush3.msra.mxu0 %v622_v37  ;;  %1046 = vmatpush3.msra.mxu1 %v631_v44 }
  0x22   :  { %1047 = vmatprep.mubr.msk.f32.mxu1 %vm1105_vm2, %v1104_v6  ;;  %1052 = vmatprep.subr.mxu0 %v1104_v6 }
  0x23   :  { %1048 = vmatmul.mubr.f32.vlgmr.msra.gmra.mxu1 %v1146_v10  ;;  %1053 = vmatpush3.msra.mxu0 %v628_v38 }
  0x24   :  { %1054 = vmatprep.mubr.msk.f32.mxu0 %vm1105_vm2, %v1104_v6  ;;  %1057 = vmatprep.subr.mxu1 %v1104_v6 }
  0x25   :  { %1055 = vmatmul.mubr.f32.vlgmr.msra.gmra.mxu0 %v1161_v17  ;;  %1058 = vmatpush3.msk.msra.mxu1 %vm27_vm0, %v1167_v24 }
  0x26   :  { %1064 = vmatprep.subr.mxu0 %v1104_v6  ;;  %1059 = vmatprep.subr.mxu1 %v1104_v6 }
  0x27   :  { %1065 = vmatpush3.msra.mxu0 %v623_v39  ;;  %1060 = vmatpush3.msra.mxu1 %v1176_v36 }
  0x28   :  { %1061 = vmatprep.mubr.msk.f32.mxu1 %vm1105_vm2, %v1104_v6  ;;  %1066 = vmatprep.subr.mxu0 %v1104_v6 }
  0x29   :  { %1062 = vmatmul.mubr.f32.vlgmr.msra.gmra.mxu1 %v1165_v22  ;;  %1067 = vmatpush3.msra.mxu0 %v629_v40 }
  0x2a   :  { %1068 = vmatprep.mubr.msk.f32.mxu0 %vm1105_vm2, %v1104_v6  ;;  %1071 = vmatprep.subr.mxu1 %v1104_v6 }
  0x2b   :  { %1069 = vmatmul.mubr.f32.vlgmr.msra.gmra.mxu0 %v1146_v10  ;;  %1072 = vmatpush3.msk.msra.mxu1 %vm27_vm0, %v1167_v24 }
  0x2c   :  { %1073 = vmatprep.subr.mxu1 %v1104_v6  ;;  %1075 = vmatprep.mubr.msk.f32.mxu1 %vm1105_vm2, %v1104_v6  ;;  %v976_v6 = vlaneseq }
  0x2d   :  { %1074 = vmatpush3.msra.mxu1 %v1176_v36 }
  0x2e   :  { %1076 = vmatmul.mubr.f32.vlgmr.msra.gmra.mxu1 %v1146_v10  ;;  %v977_v14 = vshrl.u32 %v976_v6, 7 }
  0x30   :  { %v978_v22 = vsub.s32 %v975_v13, %v977_v14 }
  0xce   :  { %v110_v45 = vpop.f32.mrf.mxu0 }
  0xd0   :  { %v112_v46 = vpop.f32.mrf.mxu0 }
  0xd1   :  { %v200_v47 = vpop.f32.mrf.mxu1 }
  0xd2   :  { %v201_v55 = vadd.f32 %v200_v47, %v110_v45 }
  0xd3   :  { %v279_v48 = vpop.f32.mrf.mxu0  ;;  %v202_v49 = vpop.f32.mrf.mxu1 }
  0xd4   :  { %v203_v52 = vadd.f32 %v202_v49, %v112_v46  ;;  %v280_v59 = vadd.f32 %v279_v48, %v201_v55 }
  0xd5   :  { %v281_v50 = vpop.f32.mrf.mxu0 }
  0xd6   :  { %v282_v57 = vadd.f32 %v281_v50, %v203_v52 }
  0xd7   :  { %v355_v51 = vpop.f32.mrf.mxu1 }
  0xd8   :  { %v356_v0 = vadd.f32 %v355_v51, %v280_v59 }
  0xd9   :  { %v437_v53 = vpop.f32.mrf.mxu0  ;;  %v357_v54 = vpop.f32.mrf.mxu1 }
  0xda   :  { %v358_v62 = vadd.f32 %v357_v54, %v282_v57  ;;  %v438_v10 = vadd.f32 %v437_v53, %v356_v0 }
  0xdb   :  { %v439_v56 = vpop.f32.mrf.mxu0 }
  0xdc   :  { %v440_v3 = vadd.f32 %v439_v56, %v358_v62 }
  0xdd   :  { %v511_v58 = vpop.f32.mrf.mxu1 }
  0xde   :  { %v512_v17 = vadd.f32 %v511_v58, %v438_v10 }
  0xdf   :  { %v588_v60 = vpop.f32.mrf.mxu0  ;;  %v513_v61 = vpop.f32.mrf.mxu1 }
  0xe0   :  { %v514_v12 = vadd.f32 %v513_v61, %v440_v3 }
  0xe1   :  { %v1042_v63 = vpop.f32.mrf.mxu0 }
  0xe2   :  { %v972_v21 = vcombine.low %v512_v17, %v514_v12 }
  0xe3   :  { %v668_v1 = vpop.f32.mrf.mxu1 }
  0xe4   :  { %v669_v2 = vadd.f32 %v668_v1, %v588_v60  ;;  %v979_v27 = vrot.slane %v972_v21, %v978_v22 }
  0xe5   :  { %v743_v7 = vpop.f32.mrf.mxu0  ;;  %v1049_v8 = vpop.f32.mrf.mxu1 }
  0xe6   :  { %v744_v9 = vadd.f32 %v743_v7, %v669_v2 }
  0xe7   :  { %v1056_v11 = vpop.f32.mrf.mxu0 }
  0xe9   :  { %v817_v15 = vpop.f32.mrf.mxu1 }
  0xea   :  { %v818_v16 = vadd.f32 %v817_v15, %v744_v9 }
  0xeb   :  { %v893_v18 = vpop.f32.mrf.mxu0  ;;  %v1063_v19 = vpop.f32.mrf.mxu1 }
  0xec   :  { %v894_v20 = vadd.f32 %v893_v18, %v818_v16 }
  0xed   :  { %v1070_v23 = vpop.f32.mrf.mxu0 }
  0xee   :  { %v965_v24 = vpop.f32.mrf.mxu1 }
  0xef   :  { %v966_v25 = vadd.f32 %v965_v24, %v894_v20 }
  0xf0   :  { %v1077_v26 = vpop.f32.mrf.mxu1 }
  0xf1   :  { %v986_v28 = vrot.slane %v966_v25, %v978_v22 }
  0xf3   :  { %v987_v29 = vcombine.low %v979_v27, %v986_v28 }
  0xf5   :  { %994 = vst.msk [vmem:[#allocation2] sm:$0x3f] %vm993_vm7, %v987_v29 }
  0xf6   :  { %1093 = shalt.err (!%p1090_p4)
}
  0xf7   :  { %1004 = dma.vmem_to_hbm [thread:$0]  %s1002_s18, 96, %s1244_s2, [#allocation3]  }
  0xf8   :  { %1102 = dma.done.wait [#allocation3], 96  }
  0xf9   :  { %1103 = vsyncadd [#allocation3], 4294967200 }
  0xfa   :  { %1008 = vsyncpa [#allocation3], 1 }

</bundles_post_ra>
